<compile_context>
chip_gen: v5e
topology: v5e:2x2
jax: 0.10.0
libtpu: 0.0.40
codegen_flags: <defaults>
</compile_context>

<pallas_src>
import jax
import jax.numpy as jnp
from jax.experimental import pallas as pl
from jax.experimental.pallas import tpu as pltpu


def _pooler_kernel(x_ref, w_ref, b_ref, o_ref):
    # x_ref: (TB, H_in)   first-token activations for this batch tile
    # w_ref: (H_in, TN)   pre-transposed weight tile (standard contraction)
    # b_ref: (1, TN)
    # o_ref: (TB, TN)
    x = x_ref[...]
    w = w_ref[...]
    b = b_ref[...].astype(jnp.float32)
    # Standard x @ w on the MXU, f32 accumulate; no transpose anywhere.
    y = jnp.dot(x, w, preferred_element_type=jnp.float32)
    o_ref[...] = jnp.tanh(y + b).astype(o_ref.dtype)


def prepare_pooler_params(weight, bias, *, param_dtype=None):
    """One-time parameter prep (amortized across all forward calls).

    weight: (H_out, H_in) PyTorch nn.Linear layout
    bias:   (H_out,)
    Returns (weight_t, bias_2d) with weight_t in (H_in, H_out) layout,
    optionally cast to `param_dtype` (e.g. jnp.bfloat16 to halve the dominant
    HBM weight stream on v5e/v6e/v7x).
    """
    weight_t = weight.T
    bias_2d = bias.reshape(1, -1)
    if param_dtype is not None:
        weight_t = weight_t.astype(param_dtype)
    return weight_t, bias_2d


def bert_pooler(hidden_states, weight_t, bias_2d, *, batch_tile=256, out_tile=512):
    """BertPooler forward.

    hidden_states: (B, S, H)
    weight_t:      (H_in, H_out)  -- already transposed by prepare_pooler_params
    bias_2d:       (1, H_out)
    """
    B, S, H = hidden_states.shape
    H_in, H_out = weight_t.shape
    assert H_in == H
    assert bias_2d.shape == (1, H_out)

    # First-token slice in the wrapper: guarantees an (8,128)-clean (B, H)
    # kernel input layout (a fused (TB, 1, H) window has a sublane dim of 1,
    # which is illegal/padded when S > 1).
    x = hidden_states[:, 0, :]  # (B, H)

    TB = min(batch_tile, B)
    TN = min(out_tile, H_out)
    grid = (pl.cdiv(B, TB), pl.cdiv(H_out, TN))

    out_dtype = hidden_states.dtype
    cost = pl.CostEstimate(
        flops=2 * B * H * H_out,
        bytes_accessed=(
            B * H * jnp.dtype(x.dtype).itemsize
            + H * H_out * jnp.dtype(weight_t.dtype).itemsize
            + H_out * jnp.dtype(bias_2d.dtype).itemsize
            + B * H_out * jnp.dtype(out_dtype).itemsize
        ),
        transcendentals=B * H_out,
    )

    return pl.pallas_call(
        _pooler_kernel,
        out_shape=jax.ShapeDtypeStruct((B, H_out), out_dtype),
        grid=grid,
        in_specs=[
            # Activations: resident across the inner (output-H) axis.
            pl.BlockSpec((TB, H), lambda i, j: (i, 0)),
            # Weight tiles stream along j -> DMA of tile j+1 overlaps compute
            # on tile j (double-buffered by the Pallas pipeline).
            pl.BlockSpec((H, TN), lambda i, j: (0, j)),
            pl.BlockSpec((1, TN), lambda i, j: (0, j)),
        ],
        out_specs=pl.BlockSpec((TB, TN), lambda i, j: (i, j)),
        compiler_params=pltpu.CompilerParams(
            # Both axes are independent (no reduction): batch AND output-H can
            # be split across TensorCores on megacore parts (v7x), so small-B
            # inference still engages both MXUs and halves per-core weight DMA.
            dimension_semantics=("parallel", "parallel"),
        ),
        cost_estimate=cost,
    )(x, weight_t, bias_2d)


def _reference(hidden_states, weight, bias):
    first_token = hidden_states[:, 0, :]
    return jnp.tanh(first_token @ weight.T + bias)


if __name__ == "__main__":
    # Small shapes consistent with the module: batch=2, seq=8, hidden=32.
    B, S, H = 2, 8, 32
    key = jax.random.PRNGKey(0)
    k_x, k_w, k_b = jax.random.split(key, 3)

    hidden_states = jax.random.normal(k_x, (B, S, H), dtype=jnp.float32)
    # Deterministic parameter init (PyTorch Linear-style uniform bound).
    bound = 1.0 / (H ** 0.5)
    weight = jax.random.uniform(k_w, (H, H), minval=-bound, maxval=bound,
                                dtype=jnp.float32)
    bias = jax.random.uniform(k_b, (H,), minval=-bound, maxval=bound,
                              dtype=jnp.float32)

    # One-time parameter prep (use param_dtype=jnp.bfloat16 in production to
    # halve the dominant weight HBM stream; kept f32 here for tight tolerance).
    weight_t, bias_2d = prepare_pooler_params(weight, bias)

    out = bert_pooler(hidden_states, weight_t, bias_2d)
    out = jax.block_until_ready(out)

    ref = _reference(hidden_states, weight, bias)
    assert out.shape == (B, H)
    assert jnp.allclose(out, ref, atol=1e-5, rtol=1e-5)

    print("KERNEL_OK")
</pallas_src>

<mosaic_0001>
module attributes {stable_mosaic.version = 11 : i64} {
  func.func @_pooler_kernel(%arg0: i32, %arg1: i32, %arg2: memref<2x32xf32, #tpu.memory_space<vmem>>, %arg3: memref<32x32xf32, #tpu.memory_space<vmem>>, %arg4: memref<1x32xf32, #tpu.memory_space<vmem>>, %arg5: memref<2x32xf32, #tpu.memory_space<vmem>>) attributes {dimension_semantics = [#tpu.dimension_semantics<parallel>, #tpu.dimension_semantics<parallel>], iteration_bounds = array<i64: 1, 1>, scalar_prefetch = 0 : i64, scratch_operands = 0 : i64, tpu.core_type = #tpu.core_type<tc>, window_params = [{transform_indices = @transform_0, window_bounds = array<i64: 2, 32>}, {transform_indices = @transform_1, window_bounds = array<i64: 32, 32>}, {transform_indices = @transform_2, window_bounds = array<i64: 1, 32>}, {transform_indices = @transform_3, window_bounds = array<i64: 2, 32>}]} {
    %c0 = arith.constant 0 : index
    %c0_0 = arith.constant 0 : index
    %0 = vector.load %arg2[%c0, %c0_0] : memref<2x32xf32, #tpu.memory_space<vmem>>, vector<2x32xf32>
    %c0_1 = arith.constant 0 : index
    %c0_2 = arith.constant 0 : index
    %1 = vector.load %arg3[%c0_1, %c0_2] : memref<32x32xf32, #tpu.memory_space<vmem>>, vector<32x32xf32>
    %c0_3 = arith.constant 0 : index
    %c0_4 = arith.constant 0 : index
    %2 = vector.load %arg4[%c0_3, %c0_4] : memref<1x32xf32, #tpu.memory_space<vmem>>, vector<1x32xf32>
    %cst = arith.constant dense<0.000000e+00> : vector<2x32xf32>
    %3 = tpu.matmul %0, %1, %cst {dimension_numbers = #tpu.dot_dimension_numbers<[1], [0], [0], [1], [0, 0, 1, 1], [], []>} : vector<2x32xf32>, vector<32x32xf32>, vector<2x32xf32> -> vector<2x32xf32>
    %4 = vector.broadcast %2 : vector<1x32xf32> to vector<2x32xf32>
    %5 = arith.addf %3, %4 : vector<2x32xf32>
    %6 = math.tanh %5 : vector<2x32xf32>
    %c0_5 = arith.constant 0 : index
    %c0_6 = arith.constant 0 : index
    %7 = vector.load %arg5[%c0_5, %c0_6] : memref<2x32xf32, #tpu.memory_space<vmem>>, vector<2x32xf32>
    tpu.vector_store %arg5[%c0_5, %c0_6], %6 {strides = array<i32>} : memref<2x32xf32, #tpu.memory_space<vmem>>, vector<2x32xf32>,
    return
  }
  func.func @transform_0(%arg0: i32, %arg1: i32) -> (i32, i32) {
    %c0_i32 = arith.constant 0 : i32
    %c0_i32_0 = arith.constant 0 : i32
    return %arg0, %c0_i32 : i32, i32
  }
  func.func @transform_1(%arg0: i32, %arg1: i32) -> (i32, i32) {
    %c0_i32 = arith.constant 0 : i32
    %c0_i32_0 = arith.constant 0 : i32
    return %c0_i32, %arg1 : i32, i32
  }
  func.func @transform_2(%arg0: i32, %arg1: i32) -> (i32, i32) {
    %c0_i32 = arith.constant 0 : i32
    %c0_i32_0 = arith.constant 0 : i32
    return %c0_i32, %arg1 : i32, i32
  }
  func.func @transform_3(%arg0: i32, %arg1: i32) -> (i32, i32) {
    %c0_i32 = arith.constant 0 : i32
    return %arg0, %arg1 : i32, i32
  }
}

</mosaic_0001>

<bundles_post_ra>
// kernel: tpu_custom_call.1
= control target key start
LH: loop header
LB: loop body
LE: loop exit
PB: predicated region body
PF: predicated region fallthrough
CT: control target
= control target key end

     0   :  { %8 = vsyncpa [#allocation3], 0  ;;  %s223_s0 = inlined_call_operand.hbm [shape: f32[2,32], index: 0, kind: input, shape index: {}]   ;;  %s224_s1 = inlined_call_operand.hbm [shape: f32[32,32], index: 1, kind: input, shape index: {}]   ;;  %s225_s2 = inlined_call_operand.vmem [shape: f32[1,32], index: 2, kind: input, shape index: {}]   ;;  %s226_s3 = inlined_call_operand.hbm [shape: f32[2,32], index: 3, kind: output, shape index: {}]  }
   0x1   :  { %9 = vsyncpa [#allocation6], 0 }
   0x2   :  { %10 = vsyncpa [#allocation4], 0  ;;  %s16_s14 = sshll.u32 %s223_s0, 4  ;;  %s186_s15 = smov [#allocation2]   ;;  %s17_s14 = int_to_ptr.hbm [resolvable:$true] %s16_s14 }
   0x3   :  { %s18_s16 = sshll.u32 %s186_s15, 4  ;;  %s26_s19 = sshll.u32 %s224_s1, 4  ;;  %s19_s16 = int_to_ptr.vmem [resolvable:$true] %s18_s16  ;;  %s27_s19 = int_to_ptr.hbm [resolvable:$true] %s26_s19 }
   0x4   :  { %21 = dma.hbm_to_vmem [thread:$0]  %s17_s14, 32, %s19_s16, [#allocation3]  }
   0x5   :  { %s187_s20 = smov [#allocation5]   ;;  %s188_s22 = smov 128  }
   0x6   :  { %s28_s21 = sshll.u32 %s187_s20, 4  ;;  %s189_s23 = smov 8   ;;  %s29_s21 = int_to_ptr.vmem [resolvable:$true] %s28_s21 }
   0x7   :  { %34 = dma.hbm_to_vmem [thread:$0]  %s27_s19, 512, %s29_s21, [#allocation6], %s188_s22, %s188_s22, %s189_s23  }
   0x8   :  { %180 = dma.done.wait [#allocation3], 32  }
   0x9   :  { %181 = vsyncadd [#allocation3], 4294967264 }
   0xa   :  { %182 = dma.done.wait [#allocation6], 512  }
   0xb   :  { %183 = vsyncadd [#allocation6], 4294966784  ;;  %v49_v0 = vld [vmem:[#allocation5 + $0x18] sm:$0xff]  ;;  %v48_v1 = vld [vmem:[#allocation5 + $0x10] sm:$0xff]  ;;  %vm54_vm0 = vcmask 261120   ;;  %s190_s24 = smov [#allocation7]  }
   0xc   :  { %70 = vmatpush.msra.mxu0 %v49_v0  ;;  %v47_v2 = vld [vmem:[#allocation5 + $0x8] sm:$0xff]  ;;  %v46_v3 = vld [vmem:[#allocation5] sm:$0xff]  ;;  %v45_v4 = vld [vmem:[#allocation2] sm:$0x3]  ;;  %s86_s25 = sshll.u32 %s190_s24, 4  ;;  %s88_s28 = sshll.u32 %s226_s3, 4  ;;  %s87_s25 = int_to_ptr.vmem [resolvable:$true] %s86_s25  ;;  %s89_s28 = int_to_ptr.hbm [resolvable:$true] %s88_s28 }
   0xd   :  { %v105_v5 = vld [vmem:[%s225_s2] ss:$0 sm:$0xff]  ;;  %vm79_vm1 = vcmask 254976  }
   0xe   :  { %71 = vmatpush.msra.mxu0 %v48_v1 }
  0x10   :  { %72 = vmatpush.msra.mxu0 %v47_v2 }
  0x12   :  { %73 = vmatpush.msra.mxu0 %v46_v3 }
  0x13   :  { %99 = vmatmul.msk.f32.vlgmr.msra.gmra.mxu0 %vm54_vm0, %v45_v4 }
  0x90   :  { %v75_v6 = vpop.f32.mrf.mxu0 }
  0x91   :  { %v76_v7 = vadd.f32 %v105_v5, %v75_v6 }
  0x93   :  { %106 = vtanh.f32 %v76_v7 }
  0x99   :  { %v107_v8 = vpop.eup %106 }
  0x9a   :  { %80 = vst.msk [vmem:[#allocation7] sm:$0x3] %vm79_vm1, %v107_v8 }
  0x9b   :  { %91 = dma.vmem_to_hbm [thread:$0]  %s87_s25, 32, %s89_s28, [#allocation4]  }
  0x9c   :  { %184 = dma.done.wait [#allocation4], 32  }
  0x9d   :  { %185 = vsyncadd [#allocation4], 4294967264 }
  0x9e   :  { %96 = vsyncpa [#allocation3], 1 }
  0x9f   :  { %97 = vsyncpa [#allocation6], 1 }
  0xa0   :  { %98 = vsyncpa [#allocation4], 1 }

</bundles_post_ra>
